<compile_context>
chip_gen: v6e
topology: v6e:2x2x1
jax: 0.10.0
libtpu: 0.0.40
codegen_flags: <defaults>
</compile_context>

<pallas_src>
import functools

import jax
import jax.numpy as jnp
import numpy as np
from jax import lax
from jax.experimental import pallas as pl
from jax.experimental.pallas import tpu as pltpu


HALO = 128  # lane-aligned zero halo on each side of the flat staging scratch


def deconv2d_kernel(x_ref, w_ref, b_ref, o_ref, pad_ref, patch_ref,
                    *, K, pad, H, W, neg_slope):
    # x_ref    : (1, Cin, H*W)        one image, channels on sublanes, H*W on lanes
    # w_ref    : (Cout, KKC_pad)      conv-equivalent (flipped) weights, zero-padded cols
    # b_ref    : (Cout, 1)            bias
    # o_ref    : (1, Cout, H*W)       output (lane-dense)
    # pad_ref  : (Cin, HALO+HW+HALO)  zero-halo flat staging scratch (lane aligned)
    # patch_ref: (KKC_pad, H*W)       im2col buffer fed to one MXU matmul
    Cin = x_ref.shape[1]
    HW = H * W
    KK = K * K
    KKC = KK * Cin
    KKC_pad = patch_ref.shape[0]

    # 1. Zero only the halo lanes; the interior is fully overwritten below.
    zero_halo = jnp.zeros((Cin, HALO), jnp.float32)
    pad_ref[:, :HALO] = zero_halo
    pad_ref[:, HALO + HW:HALO + HW + HALO] = zero_halo

    # 2. Stage the image at a lane-aligned offset (vreg-boundary store).
    pad_ref[:, HALO:HALO + HW] = x_ref[0]

    # 3. Zero the sublane-padding rows of the im2col buffer so uninitialized
    #    VMEM (possibly NaN) never reaches the MXU (0 * NaN = NaN).
    if KKC_pad > KKC:
        patch_ref[KKC:, :] = jnp.zeros((KKC_pad - KKC, HW), jnp.float32)

    # 4. Horizontal-wrap masks, generated in-kernel (iota hoisted, reused).
    col = lax.broadcasted_iota(jnp.int32, (Cin, HW), 1) % W
    wrap_valid = {dw: (col + dw >= 0) & (col + dw < W)
                  for dw in range(-pad, pad + 1) if dw != 0}

    # 5. im2col: K*K shifted (masked) copies into the patch buffer.  Vertical
    #    out-of-range taps read the zero halo; only horizontal shifts can wrap
    #    across rows and need masking.
    for kh in range(K):
        for kw in range(K):
            dh, dw = kh - pad, kw - pad
            s = dh * W + dw                                 # flat tap shift
            t = kh * K + kw
            xs = pad_ref[:, HALO + s:HALO + s + HW]         # (Cin, HW) static slice
            if dw != 0:
                xs = jnp.where(wrap_valid[dw], xs, 0.0)
            patch_ref[t * Cin:(t + 1) * Cin, :] = xs

    # 6. One MXU matmul: (Cout, KKC_pad) @ (KKC_pad, HW), f32 accumulate.
    acc = jnp.dot(w_ref[...], patch_ref[...],
                  preferred_element_type=jnp.float32,
                  precision=lax.Precision.HIGHEST)
    acc = acc + b_ref[...]                                  # bias broadcast over lanes

    # 7. LeakyReLU (negative_slope from the module config), lane-dense store.
    o_ref[0] = jnp.where(acc >= 0, acc, neg_slope * acc).astype(o_ref.dtype)


@functools.partial(jax.jit, static_argnames=("stride",))
def deconv2d_forward(x_nchw, w_t, bias, stride=1):
    """x_nchw: (N, Cin, H, W); w_t: (Cin, Cout, K, K) PyTorch ConvTranspose2d weight."""
    assert stride == 1, "this kernel implements the module's default stride=1"
    N, Cin, H, W = x_nchw.shape
    K = w_t.shape[2]
    Cout = w_t.shape[1]
    assert K % 2 == 1, "padding=(K-1)//2 equivalence assumes odd kernel size"
    p = (K - 1) // 2
    HW = H * W
    KK = K * K
    KKC = KK * Cin
    KKC_pad = ((KKC + 7) // 8) * 8           # sublane-aligned contraction dim

    # --- tiny glue (no full-tensor transposes, no HBM pad) ---
    x_flat = x_nchw.reshape(N, Cin, HW)                          # free reshape
    # conv-equivalent weight: w_mat[co, (kh*K+kw)*Cin + ci] = w_t[ci,co,K-1-kh,K-1-kw]
    w_mat = jnp.transpose(w_t[:, :, ::-1, ::-1], (1, 2, 3, 0)).reshape(Cout, KKC)
    w_mat = jnp.pad(w_mat, ((0, 0), (0, KKC_pad - KKC)))         # zero-padded columns
    b2 = bias.reshape(Cout, 1)

    kernel = functools.partial(deconv2d_kernel, K=K, pad=p, H=H, W=W,
                               neg_slope=0.2)

    out_flat = pl.pallas_call(
        kernel,
        out_shape=jax.ShapeDtypeStruct((N, Cout, HW), jnp.float32),
        grid_spec=pltpu.PrefetchScalarGridSpec(
            num_scalar_prefetch=0,
            grid=(N,),
            in_specs=[
                pl.BlockSpec((1, Cin, HW), lambda n: (n, 0, 0)),
                pl.BlockSpec((Cout, KKC_pad), lambda n: (0, 0)),
                pl.BlockSpec((Cout, 1), lambda n: (0, 0)),
            ],
            out_specs=pl.BlockSpec((1, Cout, HW), lambda n: (n, 0, 0)),
            scratch_shapes=[
                pltpu.VMEM((Cin, HALO + HW + HALO), jnp.float32),   # padded staging
                pltpu.VMEM((KKC_pad, HW), jnp.float32),             # im2col buffer
            ],
        ),
        compiler_params=pltpu.CompilerParams(
            dimension_semantics=("parallel",)),
    )(x_flat, w_mat, b2)

    return out_flat.reshape(N, Cout, H, W)                       # free reshape


def reference_forward(x_nchw, w_t, bias):
    """Pure-JAX reference of the same transposed conv + LeakyReLU."""
    N, Cin, H, W = x_nchw.shape
    K = w_t.shape[2]
    Cout = w_t.shape[1]
    p = (K - 1) // 2
    x = jnp.transpose(x_nchw, (0, 2, 3, 1))
    w_conv = jnp.transpose(w_t[:, :, ::-1, ::-1], (2, 3, 0, 1))  # HWIO
    y = lax.conv_general_dilated(
        x, w_conv, window_strides=(1, 1), padding=[(p, p), (p, p)],
        dimension_numbers=("NHWC", "HWIO", "NHWC"),
        precision=lax.Precision.HIGHEST)
    y = y + bias.reshape(1, 1, 1, Cout)
    y = jnp.where(y >= 0, y, 0.2 * y)
    return jnp.transpose(y, (0, 3, 1, 2))


if __name__ == "__main__":
    # small shapes consistent with the module
    N, Cin, H, W = 2, 4, 16, 16
    Cout, K = 8, 3

    key = jax.random.PRNGKey(0)
    kx, kw, kb = jax.random.split(key, 3)
    x = jax.random.normal(kx, (N, Cin, H, W), dtype=jnp.float32)
    # PyTorch ConvTranspose2d weight shape: (in_channels, out_channels, K, K)
    fan = Cin * K * K
    bound = 1.0 / np.sqrt(fan)
    w_t = jax.random.uniform(kw, (Cin, Cout, K, K),
                             minval=-bound, maxval=bound, dtype=jnp.float32)
    bias = jax.random.uniform(kb, (Cout,), minval=-bound, maxval=bound,
                              dtype=jnp.float32)

    out = deconv2d_forward(x, w_t, bias)
    out = jax.block_until_ready(out)

    ref = jax.block_until_ready(reference_forward(x, w_t, bias))
    np.testing.assert_allclose(np.asarray(out), np.asarray(ref),
                               rtol=1e-4, atol=1e-4)
    assert out.shape == (N, Cout, H, W)
    print("KERNEL_OK")
</pallas_src>

<mosaic_0001>
module attributes {stable_mosaic.version = 11 : i64} {
  func.func @deconv2d_kernel(%arg0: i32, %arg1: memref<1x4x256xf32, #tpu.memory_space<vmem>>, %arg2: memref<8x40xf32, #tpu.memory_space<vmem>>, %arg3: memref<8x1xf32, #tpu.memory_space<vmem>>, %arg4: memref<1x8x256xf32, #tpu.memory_space<vmem>>, %arg5: memref<4x512xf32, #tpu.memory_space<vmem>>, %arg6: memref<40x256xf32, #tpu.memory_space<vmem>>) attributes {dimension_semantics = [#tpu.dimension_semantics<parallel>], iteration_bounds = array<i64: 2>, scalar_prefetch = 0 : i64, scratch_operands = 2 : i64, tpu.core_type = #tpu.core_type<tc>, window_params = [{transform_indices = @transform_0, window_bounds = array<i64: 1, 4, 256>}, {pipeline_mode = #tpu.pipeline_mode<synchronous>, transform_indices = @transform_1, window_bounds = array<i64: 8, 40>}, {pipeline_mode = #tpu.pipeline_mode<synchronous>, transform_indices = @transform_2, window_bounds = array<i64: 8, 1>}, {transform_indices = @transform_3, window_bounds = array<i64: 1, 8, 256>}]} {
    %cst = arith.constant 0.000000e+00 : f32
    %0 = vector.broadcast %cst : f32 to vector<4x128xf32>
    %c0 = arith.constant 0 : index
    %c0_0 = arith.constant 0 : index
    %1 = vector.load %arg5[%c0, %c0_0] : memref<4x512xf32, #tpu.memory_space<vmem>>, vector<4x128xf32>
    tpu.vector_store %arg5[%c0, %c0_0], %0 {strides = array<i32>} : memref<4x512xf32, #tpu.memory_space<vmem>>, vector<4x128xf32>,
    %c0_1 = arith.constant 0 : index
    %c384 = arith.constant 384 : index
    %2 = vector.load %arg5[%c0_1, %c384] : memref<4x512xf32, #tpu.memory_space<vmem>>, vector<4x128xf32>
    tpu.vector_store %arg5[%c0_1, %c384], %0 {strides = array<i32>} : memref<4x512xf32, #tpu.memory_space<vmem>>, vector<4x128xf32>,
    %c0_2 = arith.constant 0 : index
    %c0_3 = arith.constant 0 : index
    %c0_4 = arith.constant 0 : index
    %3 = vector.load %arg1[%c0_2, %c0_3, %c0_4] : memref<1x4x256xf32, #tpu.memory_space<vmem>>, vector<1x4x256xf32>
    %4 = vector.shape_cast %3 : vector<1x4x256xf32> to vector<4x256xf32>
    %c0_5 = arith.constant 0 : index
    %c128 = arith.constant 128 : index
    %5 = vector.load %arg5[%c0_5, %c128] : memref<4x512xf32, #tpu.memory_space<vmem>>, vector<4x256xf32>
    tpu.vector_store %arg5[%c0_5, %c128], %4 {strides = array<i32>} : memref<4x512xf32, #tpu.memory_space<vmem>>, vector<4x256xf32>,
    %cst_6 = arith.constant 0.000000e+00 : f32
    %6 = vector.broadcast %cst_6 : f32 to vector<4x256xf32>
    %c36 = arith.constant 36 : index
    %c0_7 = arith.constant 0 : index
    %7 = vector.load %arg6[%c36, %c0_7] : memref<40x256xf32, #tpu.memory_space<vmem>>, vector<4x256xf32>
    tpu.vector_store %arg6[%c36, %c0_7], %6 {strides = array<i32>} : memref<40x256xf32, #tpu.memory_space<vmem>>, vector<4x256xf32>,
    %8 = tpu.iota {dimensions = array<i32: 1>} : vector<4x256xi32>
    %c16_i32 = arith.constant 16 : i32
    %c0_i32 = arith.constant 0 : i32
    %9 = arith.cmpi eq, %c16_i32, %c0_i32 : i32
    %c1_i32 = arith.constant 1 : i32
    %10 = arith.select %9, %c1_i32, %c16_i32 : i32
    %11 = vector.broadcast %10 : i32 to vector<4x256xi32>
    %12 = arith.remsi %8, %11 : vector<4x256xi32>
    %c0_i32_8 = arith.constant 0 : i32
    %13 = vector.broadcast %c0_i32_8 : i32 to vector<4x256xi32>
    %14 = arith.cmpi ne, %12, %13 : vector<4x256xi32>
    %c0_i32_9 = arith.constant 0 : i32
    %15 = vector.broadcast %c0_i32_9 : i32 to vector<4x256xi32>
    %16 = arith.cmpi slt, %12, %15 : vector<4x256xi32>
    %c0_i32_10 = arith.constant 0 : i32
    %17 = arith.cmpi slt, %10, %c0_i32_10 : i32
    %18 = vector.broadcast %17 : i1 to vector<4x256xi1>
    %19 = vector.broadcast %18 : vector<4x256xi1> to vector<4x256xi1>
    %20 = arith.xori %16, %19 : vector<4x256xi1>
    %21 = arith.andi %20, %14 : vector<4x256xi1>
    %22 = vector.broadcast %10 : i32 to vector<4x256xi32>
    %23 = arith.addi %12, %22 : vector<4x256xi32>
    %24 = arith.select %21, %23, %12 : vector<4x256xi1>, vector<4x256xi32>
    %c-1_i32 = arith.constant -1 : i32
    %25 = vector.broadcast %c-1_i32 : i32 to vector<4x256xi32>
    %26 = arith.addi %24, %25 : vector<4x256xi32>
    %c0_i32_11 = arith.constant 0 : i32
    %27 = vector.broadcast %c0_i32_11 : i32 to vector<4x256xi32>
    %28 = arith.cmpi sge, %26, %27 : vector<4x256xi32>
    %c-1_i32_12 = arith.constant -1 : i32
    %29 = vector.broadcast %c-1_i32_12 : i32 to vector<4x256xi32>
    %30 = arith.addi %24, %29 : vector<4x256xi32>
    %c16_i32_13 = arith.constant 16 : i32
    %31 = vector.broadcast %c16_i32_13 : i32 to vector<4x256xi32>
    %32 = arith.cmpi slt, %30, %31 : vector<4x256xi32>
    %33 = arith.andi %28, %32 : vector<4x256xi1>
    %c1_i32_14 = arith.constant 1 : i32
    %34 = vector.broadcast %c1_i32_14 : i32 to vector<4x256xi32>
    %35 = arith.addi %24, %34 : vector<4x256xi32>
    %c0_i32_15 = arith.constant 0 : i32
    %36 = vector.broadcast %c0_i32_15 : i32 to vector<4x256xi32>
    %37 = arith.cmpi sge, %35, %36 : vector<4x256xi32>
    %c1_i32_16 = arith.constant 1 : i32
    %38 = vector.broadcast %c1_i32_16 : i32 to vector<4x256xi32>
    %39 = arith.addi %24, %38 : vector<4x256xi32>
    %c16_i32_17 = arith.constant 16 : i32
    %40 = vector.broadcast %c16_i32_17 : i32 to vector<4x256xi32>
    %41 = arith.cmpi slt, %39, %40 : vector<4x256xi32>
    %42 = arith.andi %37, %41 : vector<4x256xi1>
    %c0_18 = arith.constant 0 : index
    %c111 = arith.constant 111 : index
    %43 = vector.load %arg5[%c0_18, %c111] : memref<4x512xf32, #tpu.memory_space<vmem>>, vector<4x256xf32>
    %cst_19 = arith.constant 0.000000e+00 : f32
    %44 = vector.broadcast %cst_19 : f32 to vector<4x256xf32>
    %45 = arith.select %33, %43, %44 : vector<4x256xi1>, vector<4x256xf32>
    %c0_20 = arith.constant 0 : index
    %c0_21 = arith.constant 0 : index
    %46 = vector.load %arg6[%c0_20, %c0_21] : memref<40x256xf32, #tpu.memory_space<vmem>>, vector<4x256xf32>
    tpu.vector_store %arg6[%c0_20, %c0_21], %45 {strides = array<i32>} : memref<40x256xf32, #tpu.memory_space<vmem>>, vector<4x256xf32>,
    %c0_22 = arith.constant 0 : index
    %c112 = arith.constant 112 : index
    %47 = vector.load %arg5[%c0_22, %c112] : memref<4x512xf32, #tpu.memory_space<vmem>>, vector<4x256xf32>
    %c4 = arith.constant 4 : index
    %c0_23 = arith.constant 0 : index
    %48 = vector.load %arg6[%c4, %c0_23] : memref<40x256xf32, #tpu.memory_space<vmem>>, vector<4x256xf32>
    tpu.vector_store %arg6[%c4, %c0_23], %47 {strides = array<i32>} : memref<40x256xf32, #tpu.memory_space<vmem>>, vector<4x256xf32>,
    %c0_24 = arith.constant 0 : index
    %c113 = arith.constant 113 : index
    %49 = vector.load %arg5[%c0_24, %c113] : memref<4x512xf32, #tpu.memory_space<vmem>>, vector<4x256xf32>
    %cst_25 = arith.constant 0.000000e+00 : f32
    %50 = vector.broadcast %cst_25 : f32 to vector<4x256xf32>
    %51 = arith.select %42, %49, %50 : vector<4x256xi1>, vector<4x256xf32>
    %c8 = arith.constant 8 : index
    %c0_26 = arith.constant 0 : index
    %52 = vector.load %arg6[%c8, %c0_26] : memref<40x256xf32, #tpu.memory_space<vmem>>, vector<4x256xf32>
    tpu.vector_store %arg6[%c8, %c0_26], %51 {strides = array<i32>} : memref<40x256xf32, #tpu.memory_space<vmem>>, vector<4x256xf32>,
    %c0_27 = arith.constant 0 : index
    %c127 = arith.constant 127 : index
    %53 = vector.load %arg5[%c0_27, %c127] : memref<4x512xf32, #tpu.memory_space<vmem>>, vector<4x256xf32>
    %cst_28 = arith.constant 0.000000e+00 : f32
    %54 = vector.broadcast %cst_28 : f32 to vector<4x256xf32>
    %55 = arith.select %33, %53, %54 : vector<4x256xi1>, vector<4x256xf32>
    %c12 = arith.constant 12 : index
    %c0_29 = arith.constant 0 : index
    %56 = vector.load %arg6[%c12, %c0_29] : memref<40x256xf32, #tpu.memory_space<vmem>>, vector<4x256xf32>
    tpu.vector_store %arg6[%c12, %c0_29], %55 {strides = array<i32>} : memref<40x256xf32, #tpu.memory_space<vmem>>, vector<4x256xf32>,
    %c0_30 = arith.constant 0 : index
    %c128_31 = arith.constant 128 : index
    %57 = vector.load %arg5[%c0_30, %c128_31] : memref<4x512xf32, #tpu.memory_space<vmem>>, vector<4x256xf32>
    %c16 = arith.constant 16 : index
    %c0_32 = arith.constant 0 : index
    %58 = vector.load %arg6[%c16, %c0_32] : memref<40x256xf32, #tpu.memory_space<vmem>>, vector<4x256xf32>
    tpu.vector_store %arg6[%c16, %c0_32], %57 {strides = array<i32>} : memref<40x256xf32, #tpu.memory_space<vmem>>, vector<4x256xf32>,
    %c0_33 = arith.constant 0 : index
    %c129 = arith.constant 129 : index
    %59 = vector.load %arg5[%c0_33, %c129] : memref<4x512xf32, #tpu.memory_space<vmem>>, vector<4x256xf32>
    %cst_34 = arith.constant 0.000000e+00 : f32
    %60 = vector.broadcast %cst_34 : f32 to vector<4x256xf32>
    %61 = arith.select %42, %59, %60 : vector<4x256xi1>, vector<4x256xf32>
    %c20 = arith.constant 20 : index
    %c0_35 = arith.constant 0 : index
    %62 = vector.load %arg6[%c20, %c0_35] : memref<40x256xf32, #tpu.memory_space<vmem>>, vector<4x256xf32>
    tpu.vector_store %arg6[%c20, %c0_35], %61 {strides = array<i32>} : memref<40x256xf32, #tpu.memory_space<vmem>>, vector<4x256xf32>,
    %c0_36 = arith.constant 0 : index
    %c143 = arith.constant 143 : index
    %63 = vector.load %arg5[%c0_36, %c143] : memref<4x512xf32, #tpu.memory_space<vmem>>, vector<4x256xf32>
    %cst_37 = arith.constant 0.000000e+00 : f32
    %64 = vector.broadcast %cst_37 : f32 to vector<4x256xf32>
    %65 = arith.select %33, %63, %64 : vector<4x256xi1>, vector<4x256xf32>
    %c24 = arith.constant 24 : index
    %c0_38 = arith.constant 0 : index
    %66 = vector.load %arg6[%c24, %c0_38] : memref<40x256xf32, #tpu.memory_space<vmem>>, vector<4x256xf32>
    tpu.vector_store %arg6[%c24, %c0_38], %65 {strides = array<i32>} : memref<40x256xf32, #tpu.memory_space<vmem>>, vector<4x256xf32>,
    %c0_39 = arith.constant 0 : index
    %c144 = arith.constant 144 : index
    %67 = vector.load %arg5[%c0_39, %c144] : memref<4x512xf32, #tpu.memory_space<vmem>>, vector<4x256xf32>
    %c28 = arith.constant 28 : index
    %c0_40 = arith.constant 0 : index
    %68 = vector.load %arg6[%c28, %c0_40] : memref<40x256xf32, #tpu.memory_space<vmem>>, vector<4x256xf32>
    tpu.vector_store %arg6[%c28, %c0_40], %67 {strides = array<i32>} : memref<40x256xf32, #tpu.memory_space<vmem>>, vector<4x256xf32>,
    %c0_41 = arith.constant 0 : index
    %c145 = arith.constant 145 : index
    %69 = vector.load %arg5[%c0_41, %c145] : memref<4x512xf32, #tpu.memory_space<vmem>>, vector<4x256xf32>
    %cst_42 = arith.constant 0.000000e+00 : f32
    %70 = vector.broadcast %cst_42 : f32 to vector<4x256xf32>
    %71 = arith.select %42, %69, %70 : vector<4x256xi1>, vector<4x256xf32>
    %c32 = arith.constant 32 : index
    %c0_43 = arith.constant 0 : index
    %72 = vector.load %arg6[%c32, %c0_43] : memref<40x256xf32, #tpu.memory_space<vmem>>, vector<4x256xf32>
    tpu.vector_store %arg6[%c32, %c0_43], %71 {strides = array<i32>} : memref<40x256xf32, #tpu.memory_space<vmem>>, vector<4x256xf32>,
    %c0_44 = arith.constant 0 : index
    %c0_45 = arith.constant 0 : index
    %73 = vector.load %arg2[%c0_44, %c0_45] : memref<8x40xf32, #tpu.memory_space<vmem>>, vector<8x40xf32>
    %c0_46 = arith.constant 0 : index
    %c0_47 = arith.constant 0 : index
    %74 = vector.load %arg6[%c0_46, %c0_47] : memref<40x256xf32, #tpu.memory_space<vmem>>, vector<40x256xf32>
    %cst_48 = arith.constant dense<0.000000e+00> : vector<8x256xf32>
    %75 = tpu.matmul %73, %74, %cst_48 {dimension_numbers = #tpu.dot_dimension_numbers<[1], [0], [0], [1], [0, 0, 1, 1], [], []>, precision = #tpu.contract_precision<fp32>} : vector<8x40xf32>, vector<40x256xf32>, vector<8x256xf32> -> vector<8x256xf32>
    %c0_49 = arith.constant 0 : index
    %c0_50 = arith.constant 0 : index
    %76 = vector.load %arg3[%c0_49, %c0_50] : memref<8x1xf32, #tpu.memory_space<vmem>>, vector<8x1xf32>
    %77 = vector.broadcast %76 : vector<8x1xf32> to vector<8x256xf32>
    %78 = arith.addf %75, %77 : vector<8x256xf32>
    %cst_51 = arith.constant 0.000000e+00 : f32
    %79 = vector.broadcast %cst_51 : f32 to vector<8x256xf32>
    %80 = arith.cmpf oge, %78, %79 : vector<8x256xf32>
    %cst_52 = arith.constant 2.000000e-01 : f32
    %81 = vector.broadcast %cst_52 : f32 to vector<8x256xf32>
    %82 = arith.mulf %81, %78 : vector<8x256xf32>
    %83 = arith.select %80, %78, %82 : vector<8x256xi1>, vector<8x256xf32>
    %c0_53 = arith.constant 0 : index
    %c0_54 = arith.constant 0 : index
    %c0_55 = arith.constant 0 : index
    %84 = vector.load %arg4[%c0_53, %c0_54, %c0_55] : memref<1x8x256xf32, #tpu.memory_space<vmem>>, vector<1x8x256xf32>
    %85 = vector.shape_cast %84 : vector<1x8x256xf32> to vector<8x256xf32>
    %86 = vector.shape_cast %83 : vector<8x256xf32> to vector<1x8x256xf32>
    tpu.vector_store %arg4[%c0_53, %c0_54, %c0_55], %86 {strides = array<i32>} : memref<1x8x256xf32, #tpu.memory_space<vmem>>, vector<1x8x256xf32>,
    return
  }
  func.func @transform_0(%arg0: i32) -> (i32, i32, i32) {
    %c0_i32 = arith.constant 0 : i32
    %c0_i32_0 = arith.constant 0 : i32
    %c0_i32_1 = arith.constant 0 : i32
    return %arg0, %c0_i32, %c0_i32_0 : i32, i32, i32
  }
  func.func @transform_1(%arg0: i32) -> (i32, i32) {
    %c0_i32 = arith.constant 0 : i32
    %c0_i32_0 = arith.constant 0 : i32
    %c0_i32_1 = arith.constant 0 : i32
    return %c0_i32, %c0_i32_0 : i32, i32
  }
  func.func @transform_2(%arg0: i32) -> (i32, i32) {
    %c0_i32 = arith.constant 0 : i32
    %c0_i32_0 = arith.constant 0 : i32
    %c0_i32_1 = arith.constant 0 : i32
    return %c0_i32, %c0_i32_0 : i32, i32
  }
  func.func @transform_3(%arg0: i32) -> (i32, i32, i32) {
    %c0_i32 = arith.constant 0 : i32
    %c0_i32_0 = arith.constant 0 : i32
    %c0_i32_1 = arith.constant 0 : i32
    return %arg0, %c0_i32, %c0_i32_0 : i32, i32, i32
  }
}

</mosaic_0001>

<bundles_post_ra>
// kernel: deconv2d_forward.1
= control target key start
LH: loop header
LB: loop body
LE: loop exit
PB: predicated region body
PF: predicated region fallthrough
CT: control target
= control target key end

     0   :  { %s1125_s12 = smov 0   ;;  %s1331_s0 = inlined_call_operand.vmem [shape: f32[2,4,256], index: 0, kind: input, shape index: {}]   ;;  %s1332_s1 = inlined_call_operand.vmem [shape: f32[8,40], index: 1, kind: input, shape index: {}]   ;;  %s1333_s2 = inlined_call_operand.vmem [shape: f32[8,1], index: 2, kind: input, shape index: {}]   ;;  %s1334_s3 = inlined_call_operand.vmem [shape: f32[2,8,256], index: 3, kind: output, shape index: {}]  }
   0x1 LB: > { %s1049_s13 = sadd.s32 4294967295, %s1093_s12   ;;  %p1053_p0 = scmp.ge.s32.totalorder %s1093_s12, 1  ;;  %s1093_s12 = sphi %s1125_s12, %s13_s12  }
   0x2   : > { %p137_p1 = scmp.lt.s32.totalorder %s1093_s12, 3 }
   0x4   : > { %p138_p2 = pnand %p1053_p0, %p137_p1 }
   0x5   : > { %p161_p3 = scmp.lt.s32.totalorder (!%p138_p2), %s1049_s13, 1  ;;  %s1096_s18 = smov (!%p138_p2), 111  }
   0x6   : > { %141 = sbr.rel (%p138_p2) target bundleno = 424 (0x1a8), region = 32  ;;  %s1097_s19 = smov (!%p138_p2), 127  }
   0x7   : > { %s1098_s20 = smov (!%p138_p2), 112   ;;  %s1099_s21 = smov (!%p138_p2), 113  }
   0x8   : > { %s1100_s22 = smov (!%p138_p2), 1   ;;  %s1101_s23 = smov (!%p138_p2), 15  }
   0x9   : > { %s1102_s24 = smov (!%p138_p2), 17   ;;  %s1103_s25 = smov (!%p138_p2), 16  }
   0xb   : > { %v1095_v0 = vmov 0.0   ;;  %s1336_s13 = smov (!%p161_p3, %s1049_s13), 1  ;;  %v407_v15 = vld [vmem:[%s1333_s2] sm:$0xff]  ;;  %v1104_v16 = vmov 0   ;;  %v177_v17 = vlaneseq  ;;  %vm322_vm0 = vcmask 1039360  }
   0xc   : > { %172 = vst [vmem:[#allocation2 + $0xc] sm:$0xf] %v1095_v0  ;;  %171 = vst [vmem:[#allocation2] sm:$0xf] %v1095_v0  ;;  %491 = vmatprep.mubr.f32.mxu0 %v1095_v0  ;;  %617 = vmatprep.mubr.f32.mxu1 %v1095_v0  ;;  %s1060_s14 = sshll.u32 %s1336_s13, 3  ;;  %vm387_vm3 = vcmask 908288  }
   0xd   : > { %175 = vst [vmem:[#allocation3 + $0x20] sm:$0xf0] %v1095_v0  ;;  %176 = vst [vmem:[#allocation3 + $0x40] sm:$0xf0] %v1095_v0  ;;  %s165_s17 = scalar_lea.vmem %s1331_s0, %s1060_s14  ;;  %1080 = vset.pattern.permute.xlu0 %v1104_v16  ;;  %v178_v18 = vand.u32 127, %v177_v17  ;;  %vm348_vm4 = vcmask 924672  }
   0xe   : > { %v173_v1 = vld [vmem:[%s165_s17] sm:$0xff]  ;;  %vm369_vm7 = vcmask 916480   ;;  %vm290_vm8 = vcmask 7168   ;;  %vm270_vm9 = vcmask 121856   ;;  %vm413_vm10 = vcmask 326656   ;;  %s1061_s30 = sshll.u32 %s1336_s13, 4 }
   0xf   : > { %174 = vst [vmem:[#allocation2 + $0x4] sm:$0xff] %v173_v1  ;;  %381 = vrot.lane.b32.xlu1 %v173_v1, %s1096_s18  ;;  %v380_v3 = vcombine.high %v173_v1, %v173_v1  ;;  %309 = vst [vmem:[#allocation3 + $0x48] sm:$0xf] %v173_v1  ;;  %v361_v9 = vcombine.low %v173_v1, %v173_v1  ;;  %v179_v19 = vadd.s32 128, %v178_v18  ;;  %v184_v22 = vand.u32 15, %v178_v18  ;;  %s170_s6 = scalar_lea.vmem %s1334_s3, %s1061_s30 }
  0x10   : > { %vm231_vm11 = vcmask 138240   ;;  %vm252_vm12 = vcmask 130048  }
  0x11   : > { %310 = vst [vmem:[#allocation3 + $0x10] sm:$0xf] %v380_v3  ;;  %v191_v23 = vand.u32 15, %v179_v19  ;;  %v1148_v26 = vadd.s32 1, %v184_v22  ;;  %v1154_v30 = vadd.s32 4294967295, %v184_v22  ;;  %v396_v22 = vld [vmem:[%s1332_s1] sm:$0xff] }
  0x13   : > { %v377_v2 = vld [vmem:[#allocation2 + $0xc] sm:$0xf]  ;;  %316 = vrot.lane.b32.xlu1 %v173_v1, %s1097_s19  ;;  %v1150_v27 = vadd.s32 1, %v191_v23  ;;  %vm216_vm1 = vcmp.lt.s32.totalorder %v1148_v26, 16  ;;  %v1156_v31 = vadd.s32 4294967295, %v191_v23  ;;  %vm206_vm5 = vcmp.ge.s32.totalorder %v1154_v30, 0 }
  0x14   : > { %385 = vrot.lane.b32.xlu0 %v377_v2, %s1096_s18  ;;  %v312_v4 = vld [vmem:[#allocation2 + $0xc] sm:$0xf] }
  0x15   : > { %v338_v5 = vld [vmem:[#allocation2 + $0xc] sm:$0xf]  ;;  %vm217_vm2 = vcmp.lt.s32.totalorder %v1150_v27, 16  ;;  %vm207_vm6 = vcmp.ge.s32.totalorder %v1156_v31, 0 }
  0x16   : > { %v279_v6 = vld [vmem:[#allocation2] sm:$0xff]  ;;  %v1083_v8 = vld [vmem:[#allocation2 + $0xc] ss:$0 sps:$4 sm:$0xff]   ;;  %v280_v10 = vld [vmem:[#allocation2 + $0x8] sm:$0xf] }
  0x17   : > { %365 = vrot.lane.b32.xlu1 %v173_v1, %s1098_s20  ;;  %v283_v7 = vcombine.high %v279_v6, %v279_v6  ;;  %v260_v11 = vld [vmem:[#allocation2 + $0x8] sm:$0xf]  ;;  %v244_v13 = vcombine.low %v279_v6, %v279_v6 }
  0x18   : > { %320 = vrot.lane.b32.xlu0 %v312_v4, %s1097_s19  ;;  %v221_v12 = vld [vmem:[#allocation2 + $0x8] sm:$0xf] }
  0x19   : > { %v1086_v14 = vld [vmem:[#allocation2 + $0x8] ss:$0 sps:$4 sm:$0xff]  }
  0x1b   : > { %318 = vrot.lane.b32.xlu1 %v380_v3, %s1097_s19 }
  0x1c   : > { %346 = vrot.lane.b32.xlu0 %v338_v5, %s1099_s21 }
  0x1f   : > { %344 = vrot.lane.b32.xlu1 %v380_v3, %s1099_s21 }
  0x20   : > { %342 = vrot.lane.b32.xlu0 %v173_v1, %s1099_s21 }
  0x23   : > { %286 = vrot.lane.b32.xlu1 %v283_v7, %s1100_s22 }
  0x24   : > { %383 = vrot.lane.b32.xlu0 %v380_v3, %s1096_s18 }
  0x27   : > { %363 = vrot.lane.b32.xlu1 %v361_v9, %s1098_s20 }
  0x28   : > { %367 = vrot.lane.b32.xlu0 %v1083_v8, %s1098_s20 }
  0x2b   : > { %266 = vrot.lane.b32.xlu1 %v283_v7, %s1101_s23 }
  0x2c   : > { %288 = vrot.lane.b32.xlu0 %v280_v10, %s1100_s22 }
  0x2f   : > { %264 = vrot.lane.b32.xlu1 %v279_v6, %s1101_s23 }
  0x30   : > { %284 = vrot.lane.b32.xlu0 %v279_v6, %s1100_s22 }
  0x33   : > { %229 = vrot.lane.b32.xlu1 %v221_v12, %s1102_s24 }
  0x34   : > { %268 = vrot.lane.b32.xlu0 %v260_v11, %s1101_s23 }
  0x37   : > { %248 = vrot.lane.b32.xlu1 %v279_v6, %s1103_s25 }
  0x38   : > { %227 = vrot.lane.b32.xlu0 %v283_v7, %s1102_s24 }
  0x3b   : > { %246 = vrot.lane.b32.xlu1 %v244_v13, %s1103_s25 }
  0x3c   : > { %225 = vrot.lane.b32.xlu0 %v279_v6, %s1102_s24 }
  0x40   : > { %250 = vrot.lane.b32.xlu0 %v1086_v14, %s1103_s25 }
  0x44   : > { %410 = vperm.xlu0 %1080, %v407_v15  }
  0x81   : > { %v382_v20 = vpop.permute.xlu1 %381 }
  0x85   : > { %v317_v24 = vpop.permute.xlu1 %316 }
  0x86   : > { %v386_v21 = vpop.permute.xlu0 %385 }
  0x89   : > { %v366_v28 = vpop.permute.xlu1 %365 }
  0x8a   : > { %v321_v25 = vpop.permute.xlu0 %320 }
  0x8d   : > { %v319_v32 = vpop.permute.xlu1 %318 }
  0x8e   : > { %v347_v29 = vpop.permute.xlu0 %346  ;;  %v323_v34 = vsel %vm322_vm0, %v317_v24, %v319_v32  ;;  %v324_v35 = vsel %vm322_vm0, %v319_v32, %v321_v25 }
  0x8f   : > { %v327_v36 = vsel %vm216_vm1, %v323_v34, 0.0  ;;  %v328_v37 = vsel %vm217_vm2, %v324_v35, 0.0 }
  0x90   : > { %v331_v38 = vrot.slane %v327_v36, 4  ;;  %v332_v39 = vrot.slane %v328_v37, 4 }
  0x91   : > { %v345_v40 = vpop.permute.xlu1 %344 }
  0x92   : > { %v343_v33 = vpop.permute.xlu0 %342  ;;  %335 = vst [vmem:[#allocation3 + $0x48] sm:$0xf0] %v331_v38  ;;  %336 = vst [vmem:[#allocation3 + $0x10] sm:$0xf0] %v332_v39  ;;  %v350_v43 = vsel %vm348_vm4, %v345_v40, %v347_v29  ;;  %v415_v38 = vsel %vm413_vm10, %v396_v22, 0 }
  0x93   : > { %v349_v42 = vsel %vm348_vm4, %v343_v33, %v345_v40  ;;  %v354_v47 = vsel %vm207_vm6, %v350_v43, 0.0 }
  0x94   : > { %v353_v46 = vsel %vm206_vm5, %v349_v42, 0.0  ;;  %356 = vst [vmem:[#allocation3 + $0x28] sm:$0xf] %v354_v47 }
  0x95   : > { %355 = vst [vmem:[#allocation3 + $0x30] sm:$0xf] %v353_v46  ;;  %v287_v50 = vpop.permute.xlu1 %286 }
  0x96   : > { %v384_v41 = vpop.permute.xlu0 %383 }
  0x97   : > { %v388_v44 = vsel %vm387_vm3, %v382_v20, %v384_v41  ;;  %v389_v45 = vsel %vm387_vm3, %v384_v41, %v386_v21 }
  0x98   : > { %v392_v48 = vsel %vm216_vm1, %v388_v44, 0.0  ;;  %v393_v49 = vsel %vm217_vm2, %v389_v45, 0.0  ;;  %v1242_v45 = vand.u32 4294901760, %v415_v38 }
  0x99   : > { %394 = vst [vmem:[#allocation3 + $0x20] sm:$0xf] %v392_v48  ;;  %395 = vst [vmem:[#allocation3 + $0x40] sm:$0xf] %v393_v49  ;;  %v364_v53 = vpop.permute.xlu1 %363  ;;  %v402_v56 = vld [vmem:[#allocation3 + $0x10] sm:$0xff]  ;;  %v401_v58 = vld [vmem:[#allocation3 + $0x48] sm:$0xff] }
  0x9a   : > { %v368_v51 = vpop.permute.xlu0 %367  ;;  %v370_v55 = vsel %vm369_vm7, %v364_v53, %v366_v28  ;;  %v1179_v3 = vand.u32 4294901760, %v402_v56  ;;  %v1181_v5 = vand.u32 4294901760, %v401_v58 }
  0x9b   : > { %v371_v52 = vsel %vm369_vm7, %v366_v28, %v368_v51  ;;  %374 = vst [vmem:[#allocation3 + $0x30] sm:$0xf0] %v370_v55 }
  0x9c   : > { %375 = vst [vmem:[#allocation3 + $0x28] sm:$0xf0] %v371_v52  ;;  %v1199_v16 = vsub.f32 %v402_v56, %v1179_v3  ;;  %v1207_v21 = vsub.f32 %v401_v58, %v1181_v5  ;;  %v1259_v56 = vsub.f32 %v415_v38, %v1242_v45 }
  0x9d   : > { %v267_v2 = vpop.permute.xlu1 %266 }
  0x9e   : > { %v289_v54 = vpop.permute.xlu0 %288  ;;  %v551_v37 = vand.u32 4294901760, %v1199_v16  ;;  %v557_v40 = vand.u32 4294901760, %v1207_v21 }
  0x9f   : > { %v292_v57 = vsel %vm290_vm8, %v287_v50, %v289_v54 }
  0xa0   : > { %v296_v59 = vsel %vm207_vm6, %v292_v57, 0.0  ;;  %v406_v60 = vld [vmem:[#allocation3 + $0x40] sm:$0xff]  ;;  %v552_v47 = vsub.f32 %v1199_v16, %v551_v37  ;;  %v558_v49 = vsub.f32 %v1207_v21, %v557_v40 }
  0xa1   : > { %v405_v61 = vld [vmem:[#allocation3 + $0x20] sm:$0xff]  ;;  %v300_v62 = vrot.slane %v296_v59, 4  ;;  %v1175_v63 = vand.u32 4294901760, %v406_v60  ;;  %v265_v15 = vpop.permute.xlu1 %264 }
  0xa2   : > { %v1177_v1 = vand.u32 4294901760, %v405_v61  ;;  %v285_v4 = vpop.permute.xlu0 %284  ;;  %v271_v18 = vsel %vm270_vm9, %v265_v15, %v267_v2  ;;  %v403_v19 = vld [vmem:[#allocation3 + $0x30] sm:$0xff]  ;;  %v553_v59 = vand.u32 4294901760, %v552_v47 }
  0xa3   : > { %304 = vst [vmem:[#allocation3 + $0x18] sm:$0xf0] %v300_v62  ;;  %v291_v6 = vsel %vm290_vm8, %v285_v4, %v287_v50  ;;  %440 = vmatprep.subr.mxu0 %v1175_v63  ;;  %v404_v7 = vld [vmem:[#allocation3 + $0x28] sm:$0xff]  ;;  %v1186_v8 = vsub.f32 %v406_v60, %v1175_v63  ;;  %v275_v28 = vsel %vm216_vm1, %v271_v18, 0.0  ;;  %v1223_v32 = vand.u32 4294901760, %v403_v19 }
  0xa4   : > { %v1189_v9 = vsub.f32 %v405_v61, %v1177_v1  ;;  %v295_v10 = vsel %vm206_vm5, %v291_v6, 0.0  ;;  %442 = vmatpush1.msra.mxu0 %v1177_v1  ;;  %v1194_v11 = vand.u32 4294901760, %v404_v7  ;;  %277 = vst [vmem:[#allocation3 + $0x38] sm:$0xf] %v275_v28  ;;  %v559_v62 = vand.u32 4294901760, %v558_v49 }
  0xa5   : > { %v299_v12 = vrot.slane %v295_v10, 4  ;;  %v527_v13 = vand.u32 4294901760, %v1186_v8  ;;  %v230_v36 = vpop.permute.xlu1 %229  ;;  %v1233_v27 = vsub.f32 %v403_v19, %v1223_v32 }
  0xa6   : > { %v533_v14 = vand.u32 4294901760, %v1189_v9  ;;  %v269_v17 = vpop.permute.xlu0 %268  ;;  %444 = vmatprep.subr.mxu0 %v1194_v11  ;;  %v1204_v20 = vsub.f32 %v404_v7, %v1194_v11  ;;  %v494_v7 = vand.u32 4294901760, %v1259_v56 }
  0xa7   : > { %303 = vst [vmem:[#allocation3 + $0x38] sm:$0xf0] %v299_v12  ;;  %v272_v23 = vsel %vm270_vm9, %v267_v2, %v269_v17  ;;  %v528_v24 = vsub.f32 %v1186_v8, %v527_v13  ;;  %446 = vmatpush1.msra.mxu0 %v1223_v32  ;;  %v545_v44 = vand.u32 4294901760, %v1233_v27 }
  0xa8   : > { %v534_v25 = vsub.f32 %v1189_v9, %v533_v14  ;;  %v276_v29 = vsel %vm217_vm2, %v272_v23, 0.0  ;;  %v539_v33 = vand.u32 4294901760, %v1204_v20  ;;  %448 = vmatprep.subr.mxu0 %v1179_v3  ;;  %v495_v17 = vsub.f32 %v1259_v56, %v494_v7 }
  0xa9   : > { %278 = vst [vmem:[#allocation3 + $0x18] sm:$0xf] %v276_v29  ;;  %v529_v34 = vand.u32 4294901760, %v528_v24  ;;  %450 = vmatpush1.msra.mxu0 %v1181_v5  ;;  %v249_v46 = vpop.permute.xlu1 %248  ;;  %v546_v31 = vsub.f32 %v1233_v27, %v545_v44 }
  0xaa   : > { %v535_v35 = vand.u32 4294901760, %v534_v25  ;;  %v228_v39 = vpop.permute.xlu0 %227  ;;  %v540_v26 = vsub.f32 %v1204_v20, %v539_v33  ;;  %v496_v28 = vand.u32 4294901760, %v495_v17 }
  0xab   : > { %530 = vmatprep.subr.mxu1 %v529_v34  ;;  %v233_v41 = vsel %vm231_vm11, %v228_v39, %v230_v36  ;;  %v547_v54 = vand.u32 4294901760, %v546_v31 }
  0xac   : > { %536 = vmatpush1.msra.mxu1 %v535_v35  ;;  %v237_v42 = vsel %vm207_vm6, %v233_v41, 0.0  ;;  %v541_v43 = vand.u32 4294901760, %v540_v26 }
  0xad   : > { %239 = vst [vmem:[#allocation3] sm:$0xf] %v237_v42  ;;  %v247_v58 = vpop.permute.xlu1 %246 }
  0xae   : > { %v226_v48 = vpop.permute.xlu0 %225  ;;  %542 = vmatprep.subr.mxu1 %v541_v43  ;;  %v399_v51 = vld [vmem:[#allocation3 + $0x38] sm:$0xff]  ;;  %v253_v61 = vsel %vm252_vm12, %v247_v58, %v249_v46 }
  0xaf   : > { %v232_v50 = vsel %vm231_vm11, %v226_v48, %v228_v39  ;;  %v1256_v55 = vand.u32 4294901760, %v399_v51  ;;  %548 = vmatpush1.msra.mxu1 %v547_v54  ;;  %257 = vst [vmem:[#allocation3 + $0x8] sm:$0xf0] %v253_v61 }
  0xb0   : > { %v236_v52 = vsel %vm206_vm5, %v232_v50, 0.0  ;;  %v400_v53 = vld [vmem:[#allocation3 + $0x18] sm:$0xff]  ;;  %554 = vmatprep.subr.mxu1 %v553_v59 }
  0xb1   : > { %238 = vst [vmem:[#allocation3 + $0x8] sm:$0xf] %v236_v52  ;;  %v1261_v57 = vand.u32 4294901760, %v400_v53  ;;  %v1265_v30 = vsub.f32 %v399_v51, %v1256_v55  ;;  %560 = vmatpush1.msra.mxu1 %v559_v62 }
  0xb2   : > { %v251_v60 = vpop.permute.xlu0 %250 }
  0xb3   : > { %v254_v2 = vsel %vm252_vm12, %v249_v46, %v251_v60  ;;  %452 = vmatprep.subr.mxu0 %v1261_v57  ;;  %v562_v4 = vsub.f32 %v400_v53, %v1261_v57  ;;  %v569_v6 = vand.u32 4294901760, %v1265_v30 }
  0xb4   : > { %258 = vst [vmem:[#allocation3] sm:$0xf0] %v254_v2  ;;  %454 = vmatpush1.msra.mxu0 %v1256_v55 }
  0xb5   : > { %v563_v10 = vand.u32 4294901760, %v562_v4  ;;  %v570_v12 = vsub.f32 %v1265_v30, %v569_v6 }
  0xb7   : > { %v564_v15 = vsub.f32 %v562_v4, %v563_v10  ;;  %v571_v19 = vand.u32 4294901760, %v570_v12 }
  0xb8   : > { %v397_v22 = vld [vmem:[#allocation3 + $0x8] sm:$0xff] }
  0xb9   : > { %v565_v18 = vand.u32 4294901760, %v564_v15  ;;  %v1275_v24 = vand.u32 4294901760, %v397_v22 }
  0xbb   : > { %566 = vmatprep.subr.mxu1 %v565_v18  ;;  %v398_v23 = vld [vmem:[#allocation3] sm:$0xff]  ;;  %v580_v29 = vsub.f32 %v397_v22, %v1275_v24 }
  0xbc   : > { %v455_v25 = vand.u32 4294901760, %v398_v23  ;;  %572 = vmatpush1.msra.mxu1 %v571_v19 }
  0xbd   : > { %v581_v35 = vand.u32 4294901760, %v580_v29 }
  0xbe   : > { %456 = vmatprep.subr.mxu0 %v455_v25  ;;  %v574_v34 = vsub.f32 %v398_v23, %v455_v25 }
  0xbf   : > { %458 = vmatpush1.msra.mxu0 %v1275_v24  ;;  %v582_v38 = vsub.f32 %v580_v29, %v581_v35 }
  0xc0   : > { %649 = vmatprep.subr.mxu0 %v1186_v8  ;;  %497 = vmatmul.mubr.f32.vlgmr.msra.gmra.mxu0 %v496_v28  ;;  %v575_v36 = vand.u32 4294901760, %v574_v34 }
  0xc1   : > { %652 = vmatpush1.msra.mxu0 %v1189_v9  ;;  %709 = vmatprep.mubr.f32.mxu0 %v1095_v0  ;;  %v583_v41 = vand.u32 4294901760, %v582_v38 }
  0xc2   : > { %655 = vmatprep.subr.mxu0 %v1204_v20  ;;  %v576_v39 = vsub.f32 %v574_v34, %v575_v36 }
  0xc3   : > { %658 = vmatpush1.msra.mxu0 %v1233_v27 }
  0xc4   : > { %v577_v26 = vand.u32 4294901760, %v576_v39  ;;  %661 = vmatprep.subr.mxu0 %v1199_v16 }
  0xc5   : > { %664 = vmatpush1.msra.mxu0 %v1207_v21 }
  0xc6   : > { %578 = vmatprep.subr.mxu1 %v577_v26  ;;  %667 = vmatprep.subr.mxu0 %v562_v4 }
  0xc7   : > { %584 = vmatpush1.msra.mxu1 %v583_v41  ;;  %670 = vmatpush1.msra.mxu0 %v1265_v30 }
  0xc8   : > { %619 = vmatmul.mubr.f32.vlgmr.msra.gmra.mxu1 %v1242_v45  ;;  %673 = vmatprep.subr.mxu0 %v574_v34 }
  0xc9   : > { %741 = vmatprep.subr.mxu1 %v1175_v63  ;;  %676 = vmatpush1.msra.mxu0 %v580_v29 }
  0xca   : > { %743 = vmatpush1.msra.mxu1 %v1177_v1  ;;  %712 = vmatmul.mubr.f32.vlgmr.msra.gmra.mxu0 %v1259_v56 }
  0xcb   : > { %745 = vmatprep.subr.mxu1 %v1194_v11  ;;  %827 = vmatprep.subr.mxu0 %v527_v13 }
  0xcc   : > { %747 = vmatpush1.msra.mxu1 %v1223_v32  ;;  %831 = vmatpush1.msra.mxu0 %v533_v14 }
  0xcd   : > { %749 = vmatprep.subr.mxu1 %v1179_v3  ;;  %835 = vmatprep.subr.mxu0 %v539_v33 }
  0xce   : > { %751 = vmatpush1.msra.mxu1 %v1181_v5  ;;  %839 = vmatpush1.msra.mxu0 %v545_v44 }
  0xcf   : > { %753 = vmatprep.subr.mxu1 %v1261_v57  ;;  %843 = vmatprep.subr.mxu0 %v551_v37 }
  0xd0   : > { %755 = vmatpush1.msra.mxu1 %v1256_v55  ;;  %847 = vmatpush1.msra.mxu0 %v557_v40 }
  0xd1   : > { %757 = vmatprep.subr.mxu1 %v455_v25  ;;  %851 = vmatprep.subr.mxu0 %v563_v10 }
  0xd2   : > { %759 = vmatpush1.msra.mxu1 %v1275_v24  ;;  %792 = vmatprep.mubr.f32.mxu1 %v1095_v0 }
  0xd3   : > { %855 = vmatpush1.msra.mxu0 %v569_v6  ;;  %796 = vmatmul.mubr.f32.vlgmr.msra.gmra.mxu1 %v494_v7 }
  0xd4   : > { %859 = vmatprep.subr.mxu0 %v575_v36  ;;  %927 = vmatprep.subr.mxu1 %v1175_v63 }
  0xd5   : > { %863 = vmatpush1.msra.mxu0 %v581_v35  ;;  %896 = vmatprep.mubr.f32.mxu0 %v1095_v0 }
  0xd6   : > { %929 = vmatpush1.msra.mxu1 %v1177_v1  ;;  %898 = vmatmul.mubr.f32.vlgmr.msra.gmra.mxu0 %v1242_v45  ;;  %v411_v1 = vpop.permute.xlu0 %410 }
  0xd7   : > { %931 = vmatprep.subr.mxu1 %v1194_v11  ;;  %978 = vmatprep.mubr.f32.mxu1 %v1095_v0 }
  0xd8   : > { %933 = vmatpush1.msra.mxu1 %v1223_v32 }
  0xd9   : > { %935 = vmatprep.subr.mxu1 %v1179_v3 }
  0xda   : > { %937 = vmatpush1.msra.mxu1 %v1181_v5 }
  0xdb   : > { %939 = vmatprep.subr.mxu1 %v1261_v57 }
  0xdc   : > { %941 = vmatpush1.msra.mxu1 %v1256_v55 }
  0xdd   : > { %943 = vmatprep.subr.mxu1 %v455_v25 }
  0xde   : > { %945 = vmatpush1.msra.mxu1 %v1275_v24 }
  0xdf   : > { %980 = vmatmul.mubr.f32.vlgmr.msra.gmra.mxu1 %v1242_v45 }
 0x180   : > { %v498_v63 = vpop.f32.mrf.mxu0 }
 0x181   : > { %v499_v0 = vadd.f32 %v498_v63, %v411_v1 }
 0x182   : > { %v500_v8 = vpop.f32.mrf.mxu0 }
 0x183   : > { %v501_v11 = vadd.f32 %v500_v8, %v411_v1 }
 0x188   : > { %v620_v9 = vpop.f32.mrf.mxu1 }
 0x189   : > { %v621_v14 = vadd.f32 %v620_v9, %v499_v0 }
 0x18a   : > { %v622_v13 = vpop.f32.mrf.mxu1  ;;  %v713_v3 = vpop.f32.mrf.mxu0 }
 0x18b   : > { %v623_v16 = vadd.f32 %v622_v13, %v501_v11  ;;  %v714_v21 = vadd.f32 %v713_v3, %v621_v14 }
 0x18c   : > { %v715_v20 = vpop.f32.mrf.mxu0 }
 0x18d   : > { %v716_v37 = vadd.f32 %v715_v20, %v623_v16 }
 0x193   : > { %v797_v5 = vpop.f32.mrf.mxu1 }
 0x194   : > { %v798_v27 = vadd.f32 %v797_v5, %v714_v21 }
 0x195   : > { %v799_v32 = vpop.f32.mrf.mxu1 }
 0x196   : > { %v899_v33 = vpop.f32.mrf.mxu0  ;;  %v800_v40 = vadd.f32 %v799_v32, %v716_v37 }
 0x197   : > { %v900_v43 = vadd.f32 %v899_v33, %v798_v27 }
 0x198   : > { %v901_v42 = vpop.f32.mrf.mxu0 }
 0x199   : > { %v902_v45 = vadd.f32 %v901_v42, %v800_v40 }
 0x19f   : > { %v981_v44 = vpop.f32.mrf.mxu1 }
 0x1a0   : > { %v982_v46 = vadd.f32 %v981_v44, %v900_v43 }
 0x1a1   : > { %v983_v47 = vpop.f32.mrf.mxu1 }
 0x1a2   : > { %vm986_vm13 = vcmp.ge.f32.partialorder %v982_v46, 0.0  ;;  %v988_v48 = vmul.f32 0.2, %v982_v46  ;;  %v984_v31 = vadd.f32 %v983_v47, %v902_v45 }
 0x1a4   : > { %v990_v49 = vsel %vm986_vm13, %v982_v46, %v988_v48  ;;  %vm987_vm14 = vcmp.ge.f32.partialorder %v984_v31, 0.0  ;;  %v989_v50 = vmul.f32 0.2, %v984_v31 }
 0x1a5   : > { %992 = vst [vmem:[%s170_s6] sm:$0xff] %v990_v49 }
 0x1a6   : > { %v991_v51 = vsel %vm987_vm14, %v984_v31, %v989_v50 }
 0x1a7   : > { %993 = vst [vmem:[%s170_s6 + $0x8] sm:$0xff] %v991_v51 }
 0x1a8 PF: > { %s13_s12 = sadd.s32 1, %s1093_s12  }
 0x1a9   : > { %p10_p4 = scmp.ge.s32.totalorder %s13_s12, 4  }
 0x1ab   :  { %12 = sbr.rel (!%p10_p4) target bundleno = 1 (0x1), region = 62 }

</bundles_post_ra>
